<compile_context>
chip_gen: v5e
topology: v5e:2x2
jax: 0.10.0
libtpu: 0.0.40
codegen_flags: <defaults>
</compile_context>

<pallas_src>
import math
import functools

import jax
import jax.numpy as jnp
from jax import lax
from jax.experimental import pallas as pl
from jax.experimental.pallas import tpu as pltpu


# ----------------------------- static packing helpers ------------------------

def _round_up(x, m):
    return (x + m - 1) // m * m


def _pack_offsets(e_dim, k_dim, v_dim):
    """Sublane-aligned row offsets of wq/wk/wv/wo inside the packed weight slab."""
    off_q = 0
    off_k = off_q + _round_up(e_dim, 8)
    off_v = off_k + _round_up(k_dim, 8)
    off_o = off_v + _round_up(v_dim, 8)
    rows = off_o + _round_up(e_dim, 8)
    return off_q, off_k, off_v, off_o, rows


# ----------------------------- fused Pallas kernel ---------------------------

def _fused_mha_kernel(xq_ref, xk_ref, xv_ref, w_ref, b_ref, o_ref, *aw_refs,
                      n_heads, n_batch, need_weights):
    """Single invocation; all batches/heads handled in-register."""
    L = xq_ref.shape[0]
    S = xk_ref.shape[0]
    N = n_batch
    E = xq_ref.shape[1] // N
    Ek = xk_ref.shape[1] // N
    Ev = xv_ref.shape[1] // N
    H = n_heads
    Dh = E // H
    oq, ok, ov, oo, _ = _pack_offsets(E, Ek, Ev)

    # Packed parameters: static sublane slices of the 2 operand slabs.
    wq = w_ref[oq:oq + E, :]       # (E, E)   -- 1/sqrt(Dh) folded in
    wk = w_ref[ok:ok + Ek, :]      # (Ek, E)
    wv = w_ref[ov:ov + Ev, :]      # (Ev, E)
    wo = w_ref[oo:oo + E, :]       # (E, E)
    bq = b_ref[0:1, :]             # (1, E)   -- scaled
    bk = b_ref[1:2, :]
    bv = b_ref[2:3, :]
    bo = b_ref[3:4, :]

    xq = xq_ref[...]               # (L, N*E)   seq-first, batch folded into lanes
    xk = xk_ref[...]               # (S, N*Ek)
    xv = xv_ref[...]               # (S, N*Ev)

    # Batch-major row stacking: static lane slices + one sublane concat each
    # (stays in vregs; replaces wrapper-side HBM transposes).
    xq_b = jnp.concatenate([xq[:, n * E:(n + 1) * E] for n in range(N)], axis=0)     # (N*L, E)
    xk_b = jnp.concatenate([xk[:, n * Ek:(n + 1) * Ek] for n in range(N)], axis=0)   # (N*S, Ek)
    xv_b = jnp.concatenate([xv[:, n * Ev:(n + 1) * Ev] for n in range(N)], axis=0)   # (N*S, Ev)

    # Input projections batched over every batch row (one fat MXU matmul each).
    q = jnp.dot(xq_b, wq, preferred_element_type=jnp.float32) + bq    # (N*L, E)  (pre-scaled)
    k = jnp.dot(xk_b, wk, preferred_element_type=jnp.float32) + bk    # (N*S, E)
    v = jnp.dot(xv_b, wv, preferred_element_type=jnp.float32) + bv    # (N*S, E)

    nt = (((1,), (1,)), ((), ()))   # contract last dims: q @ k^T with no transpose

    outs = []
    aws = []
    for n in range(N):              # static unroll (N tiny)
        r0, r1 = n * L, (n + 1) * L
        c0, c1 = n * S, (n + 1) * S
        out_n = jnp.zeros((L, E), jnp.float32)
        aw_n = jnp.zeros((L, S), jnp.float32)
        for h in range(H):          # static unroll; wo folded in -> no ctx concat
            d0, d1 = h * Dh, (h + 1) * Dh
            s = lax.dot_general(q[r0:r1, d0:d1], k[c0:c1, d0:d1], nt,
                                preferred_element_type=jnp.float32)    # (L, S)
            m = jnp.max(s, axis=-1, keepdims=True)
            p = jnp.exp(s - m)
            probs = p / jnp.sum(p, axis=-1, keepdims=True)             # exact softmax
            ctx = jnp.dot(probs, v[c0:c1, d0:d1],
                          preferred_element_type=jnp.float32)          # (L, Dh)
            out_n = out_n + jnp.dot(ctx, wo[d0:d1, :],
                                    preferred_element_type=jnp.float32)
            if need_weights:
                aw_n = aw_n + probs
        outs.append(out_n + bo)
        if need_weights:
            aws.append(aw_n * (1.0 / H))

    # attn_output, still batch-folded-in-lanes: (L, N*E)
    o_ref[...] = jnp.concatenate(outs, axis=1).astype(o_ref.dtype)
    if need_weights:
        aw_refs[0][...] = jnp.concatenate(
            [a[None] for a in aws], axis=0).astype(aw_refs[0].dtype)   # (N, L, S)


def fused_mha(query, key, value, prep, n_heads, need_weights=True):
    """query: (L, N, E), key: (S, N, Ek), value: (S, N, Ev)  (torch seq-first)."""
    L, N, E = query.shape
    S = key.shape[0]
    Ek = key.shape[2]
    Ev = value.shape[2]
    rows = prep["w_pack"].shape[0]

    # Free, layout-preserving reshapes (no transpose copies / extra kernels).
    xq2 = query.reshape(L, N * E)
    xk2 = key.reshape(S, N * Ek)
    xv2 = value.reshape(S, N * Ev)

    out_shapes = [jax.ShapeDtypeStruct((L, N * E), jnp.float32)]
    out_specs = [pl.BlockSpec((L, N * E), lambda i: (0, 0))]
    if need_weights:
        out_shapes.append(jax.ShapeDtypeStruct((N, L, S), jnp.float32))
        out_specs.append(pl.BlockSpec((N, L, S), lambda i: (0, 0, 0)))

    grid_spec = pl.GridSpec(
        grid=(1,),                                      # single step: no per-batch grid overhead
        in_specs=[
            pl.BlockSpec((L, N * E), lambda i: (0, 0)),
            pl.BlockSpec((S, N * Ek), lambda i: (0, 0)),
            pl.BlockSpec((S, N * Ev), lambda i: (0, 0)),
            pl.BlockSpec((rows, E), lambda i: (0, 0)),  # packed weights (1 DMA)
            pl.BlockSpec((4, E), lambda i: (0, 0)),     # packed biases  (1 DMA)
        ],
        out_specs=out_specs,
    )

    outs = pl.pallas_call(
        functools.partial(_fused_mha_kernel, n_heads=n_heads, n_batch=N,
                          need_weights=need_weights),
        out_shape=tuple(out_shapes),
        grid_spec=grid_spec,
        compiler_params=pltpu.CompilerParams(
            dimension_semantics=("arbitrary",)),
    )(xq2, xk2, xv2, prep["w_pack"], prep["b_pack"])

    attn_out = outs[0].reshape(L, N, E)                 # free reshape back to (L, N, E)
    attn_w = outs[1] if need_weights else None
    return attn_out, attn_w


# ----------------------------- module wrapper --------------------------------

def init_params(key, d_key, d_value, n_heads):
    """Deterministic synthetic parameters matching nn.MultiheadAttention shapes
    (separate q/k/v projection weights since vdim != embed_dim)."""
    del n_heads
    ks = jax.random.split(key, 4)

    def xavier(k, shape):
        fan_out, fan_in = shape
        limit = math.sqrt(6.0 / (fan_in + fan_out))
        return jax.random.uniform(k, shape, jnp.float32, -limit, limit)

    return {
        "wq": xavier(ks[0], (d_key, d_key)),      # (E, E)
        "wk": xavier(ks[1], (d_key, d_key)),      # (E, kdim)
        "wv": xavier(ks[2], (d_key, d_value)),    # (E, vdim)
        "wo": xavier(ks[3], (d_key, d_key)),      # (E, E)
        "bq": jnp.zeros((d_key,), jnp.float32),
        "bk": jnp.zeros((d_key,), jnp.float32),
        "bv": jnp.zeros((d_key,), jnp.float32),
        "bo": jnp.zeros((d_key,), jnp.float32),
    }


def prepare_params(params, n_heads):
    """One-off static prep: transpose weights to (in, out), fold the 1/sqrt(Dh)
    scale into the q projection, and pack everything into 2 operands."""
    E = params["wq"].shape[0]
    Ek = params["wk"].shape[1]
    Ev = params["wv"].shape[1]
    scale = 1.0 / math.sqrt(E // n_heads)
    oq, ok, ov, oo, rows = _pack_offsets(E, Ek, Ev)

    w_pack = jnp.zeros((rows, E), jnp.float32)
    w_pack = w_pack.at[oq:oq + E, :].set((params["wq"] * scale).T)
    w_pack = w_pack.at[ok:ok + Ek, :].set(params["wk"].T)
    w_pack = w_pack.at[ov:ov + Ev, :].set(params["wv"].T)
    w_pack = w_pack.at[oo:oo + E, :].set(params["wo"].T)

    b_pack = jnp.stack([params["bq"] * scale, params["bk"],
                        params["bv"], params["bo"]], axis=0)   # (4, E)
    return {"w_pack": w_pack, "b_pack": b_pack}


def my_multihead_attention(query, key, value, prep, n_heads, need_weights=True):
    """Forward pass (attend_mode default, window=-1, mask=None, droprate=0).

    query: (L, N, E), key: (S, N, E_k), value: (S, N, E_v)
    returns: attn_output (L, N, E), attn_weights (N, L, S) (or None).
    """
    # TODO(synk): attend_mode windows / attn_mask / key_padding_mask / dropout
    # are not modeled (the reference's mask construction raises in PyTorch).
    return fused_mha(query, key, value, prep, n_heads, need_weights)


# --------------------------------- reference ---------------------------------

def _reference(query, key, value, params, n_heads):
    L, N, E = query.shape
    S = key.shape[0]
    Dh = E // n_heads
    scale = 1.0 / math.sqrt(Dh)
    q = (query.reshape(L * N, E) @ params["wq"].T + params["bq"]) * scale
    k = key.reshape(S * N, -1) @ params["wk"].T + params["bk"]
    v = value.reshape(S * N, -1) @ params["wv"].T + params["bv"]
    q = q.reshape(L, N * n_heads, Dh).transpose(1, 0, 2)
    k = k.reshape(S, N * n_heads, Dh).transpose(1, 0, 2)
    v = v.reshape(S, N * n_heads, Dh).transpose(1, 0, 2)
    s = jnp.einsum("bld,bsd->bls", q, k)
    w = jax.nn.softmax(s, axis=-1)
    o = jnp.einsum("bls,bsd->bld", w, v)
    o = o.transpose(1, 0, 2).reshape(L * N, E)
    o = (o @ params["wo"].T + params["bo"]).reshape(L, N, E)
    aw = w.reshape(N, n_heads, L, S).mean(axis=1)
    return o, aw


# ------------------------------------ demo -----------------------------------

if __name__ == "__main__":
    d_key, d_value, n_heads = 32, 48, 4      # droprate=0.0, attend_mode='full', window=-1
    L = S = 8
    N = 2

    root = jax.random.PRNGKey(0)
    k_p, k_q, k_k, k_v = jax.random.split(root, 4)

    params = init_params(k_p, d_key, d_value, n_heads)
    prep = prepare_params(params, n_heads)

    query = jax.random.normal(k_q, (L, N, d_key), jnp.float32)
    key = jax.random.normal(k_k, (S, N, d_key), jnp.float32)
    value = jax.random.normal(k_v, (S, N, d_value), jnp.float32)

    fwd = jax.jit(functools.partial(my_multihead_attention, n_heads=n_heads))
    attn_out, attn_w = fwd(query, key, value, prep)
    jax.block_until_ready((attn_out, attn_w))

    assert attn_out.shape == (L, N, d_key)
    assert attn_w.shape == (N, L, S)
    # exact softmax -> head-averaged rows sum to 1 to f32 precision
    assert bool(jnp.allclose(attn_w.sum(-1), 1.0, atol=1e-5))

    ref_out, ref_w = _reference(query, key, value, params, n_heads)
    assert bool(jnp.allclose(attn_out, ref_out, atol=1e-2, rtol=1e-2))
    assert bool(jnp.allclose(attn_w, ref_w, atol=1e-2, rtol=1e-2))

    # need_weights=False fast path: no (N, L, S) writeback, same output.
    fwd_nw = jax.jit(functools.partial(my_multihead_attention, n_heads=n_heads,
                                       need_weights=False))
    out_only, no_w = fwd_nw(query, key, value, prep)
    jax.block_until_ready(out_only)
    assert no_w is None
    assert bool(jnp.allclose(out_only, attn_out, atol=1e-4))

    print("KERNEL_OK")
</pallas_src>

<mosaic_0001>
module attributes {stable_mosaic.version = 11 : i64} {
  func.func @_fused_mha_kernel(%arg0: i32, %arg1: memref<8x64xf32, #tpu.memory_space<vmem>>, %arg2: memref<8x64xf32, #tpu.memory_space<vmem>>, %arg3: memref<8x96xf32, #tpu.memory_space<vmem>>, %arg4: memref<144x32xf32, #tpu.memory_space<vmem>>, %arg5: memref<4x32xf32, #tpu.memory_space<vmem>>, %arg6: memref<8x64xf32, #tpu.memory_space<vmem>>, %arg7: memref<2x8x8xf32, #tpu.memory_space<vmem>>) attributes {dimension_semantics = [#tpu.dimension_semantics<arbitrary>], iteration_bounds = array<i64: 1>, scalar_prefetch = 0 : i64, scratch_operands = 0 : i64, tpu.core_type = #tpu.core_type<tc>, window_params = [{pipeline_mode = #tpu.pipeline_mode<synchronous>, transform_indices = @transform_0, window_bounds = array<i64: 8, 64>}, {pipeline_mode = #tpu.pipeline_mode<synchronous>, transform_indices = @transform_1, window_bounds = array<i64: 8, 64>}, {pipeline_mode = #tpu.pipeline_mode<synchronous>, transform_indices = @transform_2, window_bounds = array<i64: 8, 96>}, {pipeline_mode = #tpu.pipeline_mode<synchronous>, transform_indices = @transform_3, window_bounds = array<i64: 144, 32>}, {pipeline_mode = #tpu.pipeline_mode<synchronous>, transform_indices = @transform_4, window_bounds = array<i64: 4, 32>}, {pipeline_mode = #tpu.pipeline_mode<synchronous>, transform_indices = @transform_5, window_bounds = array<i64: 8, 64>}, {pipeline_mode = #tpu.pipeline_mode<synchronous>, transform_indices = @transform_6, window_bounds = array<i64: 2, 8, 8>}]} {
    %c0 = arith.constant 0 : index
    %c0_0 = arith.constant 0 : index
    %0 = vector.load %arg4[%c0, %c0_0] : memref<144x32xf32, #tpu.memory_space<vmem>>, vector<32x32xf32>
    %c32 = arith.constant 32 : index
    %c0_1 = arith.constant 0 : index
    %1 = vector.load %arg4[%c32, %c0_1] : memref<144x32xf32, #tpu.memory_space<vmem>>, vector<32x32xf32>
    %c64 = arith.constant 64 : index
    %c0_2 = arith.constant 0 : index
    %2 = vector.load %arg4[%c64, %c0_2] : memref<144x32xf32, #tpu.memory_space<vmem>>, vector<48x32xf32>
    %c112 = arith.constant 112 : index
    %c0_3 = arith.constant 0 : index
    %3 = vector.load %arg4[%c112, %c0_3] : memref<144x32xf32, #tpu.memory_space<vmem>>, vector<32x32xf32>
    %c0_4 = arith.constant 0 : index
    %c0_5 = arith.constant 0 : index
    %4 = vector.load %arg5[%c0_4, %c0_5] : memref<4x32xf32, #tpu.memory_space<vmem>>, vector<1x32xf32>
    %c1 = arith.constant 1 : index
    %c0_6 = arith.constant 0 : index
    %5 = vector.load %arg5[%c1, %c0_6] : memref<4x32xf32, #tpu.memory_space<vmem>>, vector<1x32xf32>
    %c2 = arith.constant 2 : index
    %c0_7 = arith.constant 0 : index
    %6 = vector.load %arg5[%c2, %c0_7] : memref<4x32xf32, #tpu.memory_space<vmem>>, vector<1x32xf32>
    %c3 = arith.constant 3 : index
    %c0_8 = arith.constant 0 : index
    %7 = vector.load %arg5[%c3, %c0_8] : memref<4x32xf32, #tpu.memory_space<vmem>>, vector<1x32xf32>
    %c0_9 = arith.constant 0 : index
    %c0_10 = arith.constant 0 : index
    %8 = vector.load %arg1[%c0_9, %c0_10] : memref<8x64xf32, #tpu.memory_space<vmem>>, vector<8x64xf32>
    %c0_11 = arith.constant 0 : index
    %c0_12 = arith.constant 0 : index
    %9 = vector.load %arg2[%c0_11, %c0_12] : memref<8x64xf32, #tpu.memory_space<vmem>>, vector<8x64xf32>
    %c0_13 = arith.constant 0 : index
    %c0_14 = arith.constant 0 : index
    %10 = vector.load %arg3[%c0_13, %c0_14] : memref<8x96xf32, #tpu.memory_space<vmem>>, vector<8x96xf32>
    %11 = vector.extract_strided_slice %8 {offsets = [0, 0], sizes = [8, 32], strides = [1, 1]} : vector<8x64xf32> to vector<8x32xf32>
    %12 = vector.extract_strided_slice %8 {offsets = [0, 32], sizes = [8, 32], strides = [1, 1]} : vector<8x64xf32> to vector<8x32xf32>
    %13 = tpu.concatenate %11, %12 in 0 : vector<8x32xf32>, vector<8x32xf32> -> vector<16x32xf32>
    %14 = vector.extract_strided_slice %9 {offsets = [0, 0], sizes = [8, 32], strides = [1, 1]} : vector<8x64xf32> to vector<8x32xf32>
    %15 = vector.extract_strided_slice %9 {offsets = [0, 32], sizes = [8, 32], strides = [1, 1]} : vector<8x64xf32> to vector<8x32xf32>
    %16 = tpu.concatenate %14, %15 in 0 : vector<8x32xf32>, vector<8x32xf32> -> vector<16x32xf32>
    %17 = vector.extract_strided_slice %10 {offsets = [0, 0], sizes = [8, 48], strides = [1, 1]} : vector<8x96xf32> to vector<8x48xf32>
    %18 = vector.extract_strided_slice %10 {offsets = [0, 48], sizes = [8, 48], strides = [1, 1]} : vector<8x96xf32> to vector<8x48xf32>
    %19 = tpu.concatenate %17, %18 in 0 : vector<8x48xf32>, vector<8x48xf32> -> vector<16x48xf32>
    %cst = arith.constant dense<0.000000e+00> : vector<16x32xf32>
    %20 = tpu.matmul %13, %0, %cst {dimension_numbers = #tpu.dot_dimension_numbers<[1], [0], [0], [1], [0, 0, 1, 1], [], []>} : vector<16x32xf32>, vector<32x32xf32>, vector<16x32xf32> -> vector<16x32xf32>
    %21 = vector.broadcast %4 : vector<1x32xf32> to vector<16x32xf32>
    %22 = arith.addf %20, %21 : vector<16x32xf32>
    %cst_15 = arith.constant dense<0.000000e+00> : vector<16x32xf32>
    %23 = tpu.matmul %16, %1, %cst_15 {dimension_numbers = #tpu.dot_dimension_numbers<[1], [0], [0], [1], [0, 0, 1, 1], [], []>} : vector<16x32xf32>, vector<32x32xf32>, vector<16x32xf32> -> vector<16x32xf32>
    %24 = vector.broadcast %5 : vector<1x32xf32> to vector<16x32xf32>
    %25 = arith.addf %23, %24 : vector<16x32xf32>
    %cst_16 = arith.constant dense<0.000000e+00> : vector<16x32xf32>
    %26 = tpu.matmul %19, %2, %cst_16 {dimension_numbers = #tpu.dot_dimension_numbers<[1], [0], [0], [1], [0, 0, 1, 1], [], []>} : vector<16x48xf32>, vector<48x32xf32>, vector<16x32xf32> -> vector<16x32xf32>
    %27 = vector.broadcast %6 : vector<1x32xf32> to vector<16x32xf32>
    %28 = arith.addf %26, %27 : vector<16x32xf32>
    %cst_17 = arith.constant 0.000000e+00 : f32
    %29 = vector.broadcast %cst_17 : f32 to vector<8x32xf32>
    %cst_18 = arith.constant 0.000000e+00 : f32
    %30 = vector.broadcast %cst_18 : f32 to vector<8x8xf32>
    %31 = vector.extract_strided_slice %22 {offsets = [0, 0], sizes = [8, 8], strides = [1, 1]} : vector<16x32xf32> to vector<8x8xf32>
    %32 = vector.extract_strided_slice %25 {offsets = [0, 0], sizes = [8, 8], strides = [1, 1]} : vector<16x32xf32> to vector<8x8xf32>
    %cst_19 = arith.constant dense<0.000000e+00> : vector<8x8xf32>
    %33 = tpu.matmul %31, %32, %cst_19 {dimension_numbers = #tpu.dot_dimension_numbers<[1], [1], [0], [0], [0, 0, 1, 0], [], []>} : vector<8x8xf32>, vector<8x8xf32>, vector<8x8xf32> -> vector<8x8xf32>
    %cst_20 = arith.constant dense<0xFF800000> : vector<8xf32>
    %34 = vector.multi_reduction <maximumf>, %33, %cst_20 [1] : vector<8x8xf32> to vector<8xf32>
    %35 = vector.shape_cast %34 : vector<8xf32> to vector<8x1xf32>
    %36 = vector.broadcast %35 : vector<8x1xf32> to vector<8x8xf32>
    %37 = arith.subf %33, %36 : vector<8x8xf32>
    %38 = math.exp %37 : vector<8x8xf32>
    %cst_21 = arith.constant dense<0.000000e+00> : vector<8xf32>
    %39 = vector.multi_reduction <add>, %38, %cst_21 [1] : vector<8x8xf32> to vector<8xf32>
    %40 = vector.shape_cast %39 : vector<8xf32> to vector<8x1xf32>
    %41 = vector.broadcast %40 : vector<8x1xf32> to vector<8x8xf32>
    %42 = arith.divf %38, %41 : vector<8x8xf32>
    %43 = vector.extract_strided_slice %28 {offsets = [0, 0], sizes = [8, 8], strides = [1, 1]} : vector<16x32xf32> to vector<8x8xf32>
    %cst_22 = arith.constant dense<0.000000e+00> : vector<8x8xf32>
    %44 = tpu.matmul %42, %43, %cst_22 {dimension_numbers = #tpu.dot_dimension_numbers<[1], [0], [0], [1], [0, 0, 1, 1], [], []>} : vector<8x8xf32>, vector<8x8xf32>, vector<8x8xf32> -> vector<8x8xf32>
    %45 = vector.extract_strided_slice %3 {offsets = [0, 0], sizes = [8, 32], strides = [1, 1]} : vector<32x32xf32> to vector<8x32xf32>
    %cst_23 = arith.constant dense<0.000000e+00> : vector<8x32xf32>
    %46 = tpu.matmul %44, %45, %cst_23 {dimension_numbers = #tpu.dot_dimension_numbers<[1], [0], [0], [1], [0, 0, 1, 1], [], []>} : vector<8x8xf32>, vector<8x32xf32>, vector<8x32xf32> -> vector<8x32xf32>
    %47 = arith.addf %29, %46 : vector<8x32xf32>
    %48 = arith.addf %30, %42 : vector<8x8xf32>
    %49 = vector.extract_strided_slice %22 {offsets = [0, 8], sizes = [8, 8], strides = [1, 1]} : vector<16x32xf32> to vector<8x8xf32>
    %50 = vector.extract_strided_slice %25 {offsets = [0, 8], sizes = [8, 8], strides = [1, 1]} : vector<16x32xf32> to vector<8x8xf32>
    %cst_24 = arith.constant dense<0.000000e+00> : vector<8x8xf32>
    %51 = tpu.matmul %49, %50, %cst_24 {dimension_numbers = #tpu.dot_dimension_numbers<[1], [1], [0], [0], [0, 0, 1, 0], [], []>} : vector<8x8xf32>, vector<8x8xf32>, vector<8x8xf32> -> vector<8x8xf32>
    %cst_25 = arith.constant dense<0xFF800000> : vector<8xf32>
    %52 = vector.multi_reduction <maximumf>, %51, %cst_25 [1] : vector<8x8xf32> to vector<8xf32>
    %53 = vector.shape_cast %52 : vector<8xf32> to vector<8x1xf32>
    %54 = vector.broadcast %53 : vector<8x1xf32> to vector<8x8xf32>
    %55 = arith.subf %51, %54 : vector<8x8xf32>
    %56 = math.exp %55 : vector<8x8xf32>
    %cst_26 = arith.constant dense<0.000000e+00> : vector<8xf32>
    %57 = vector.multi_reduction <add>, %56, %cst_26 [1] : vector<8x8xf32> to vector<8xf32>
    %58 = vector.shape_cast %57 : vector<8xf32> to vector<8x1xf32>
    %59 = vector.broadcast %58 : vector<8x1xf32> to vector<8x8xf32>
    %60 = arith.divf %56, %59 : vector<8x8xf32>
    %61 = vector.extract_strided_slice %28 {offsets = [0, 8], sizes = [8, 8], strides = [1, 1]} : vector<16x32xf32> to vector<8x8xf32>
    %cst_27 = arith.constant dense<0.000000e+00> : vector<8x8xf32>
    %62 = tpu.matmul %60, %61, %cst_27 {dimension_numbers = #tpu.dot_dimension_numbers<[1], [0], [0], [1], [0, 0, 1, 1], [], []>} : vector<8x8xf32>, vector<8x8xf32>, vector<8x8xf32> -> vector<8x8xf32>
    %63 = vector.extract_strided_slice %3 {offsets = [8, 0], sizes = [8, 32], strides = [1, 1]} : vector<32x32xf32> to vector<8x32xf32>
    %cst_28 = arith.constant dense<0.000000e+00> : vector<8x32xf32>
    %64 = tpu.matmul %62, %63, %cst_28 {dimension_numbers = #tpu.dot_dimension_numbers<[1], [0], [0], [1], [0, 0, 1, 1], [], []>} : vector<8x8xf32>, vector<8x32xf32>, vector<8x32xf32> -> vector<8x32xf32>
    %65 = arith.addf %47, %64 : vector<8x32xf32>
    %66 = arith.addf %48, %60 : vector<8x8xf32>
    %67 = vector.extract_strided_slice %22 {offsets = [0, 16], sizes = [8, 8], strides = [1, 1]} : vector<16x32xf32> to vector<8x8xf32>
    %68 = vector.extract_strided_slice %25 {offsets = [0, 16], sizes = [8, 8], strides = [1, 1]} : vector<16x32xf32> to vector<8x8xf32>
    %cst_29 = arith.constant dense<0.000000e+00> : vector<8x8xf32>
    %69 = tpu.matmul %67, %68, %cst_29 {dimension_numbers = #tpu.dot_dimension_numbers<[1], [1], [0], [0], [0, 0, 1, 0], [], []>} : vector<8x8xf32>, vector<8x8xf32>, vector<8x8xf32> -> vector<8x8xf32>
    %cst_30 = arith.constant dense<0xFF800000> : vector<8xf32>
    %70 = vector.multi_reduction <maximumf>, %69, %cst_30 [1] : vector<8x8xf32> to vector<8xf32>
    %71 = vector.shape_cast %70 : vector<8xf32> to vector<8x1xf32>
    %72 = vector.broadcast %71 : vector<8x1xf32> to vector<8x8xf32>
    %73 = arith.subf %69, %72 : vector<8x8xf32>
    %74 = math.exp %73 : vector<8x8xf32>
    %cst_31 = arith.constant dense<0.000000e+00> : vector<8xf32>
    %75 = vector.multi_reduction <add>, %74, %cst_31 [1] : vector<8x8xf32> to vector<8xf32>
    %76 = vector.shape_cast %75 : vector<8xf32> to vector<8x1xf32>
    %77 = vector.broadcast %76 : vector<8x1xf32> to vector<8x8xf32>
    %78 = arith.divf %74, %77 : vector<8x8xf32>
    %79 = vector.extract_strided_slice %28 {offsets = [0, 16], sizes = [8, 8], strides = [1, 1]} : vector<16x32xf32> to vector<8x8xf32>
    %cst_32 = arith.constant dense<0.000000e+00> : vector<8x8xf32>
    %80 = tpu.matmul %78, %79, %cst_32 {dimension_numbers = #tpu.dot_dimension_numbers<[1], [0], [0], [1], [0, 0, 1, 1], [], []>} : vector<8x8xf32>, vector<8x8xf32>, vector<8x8xf32> -> vector<8x8xf32>
    %81 = vector.extract_strided_slice %3 {offsets = [16, 0], sizes = [8, 32], strides = [1, 1]} : vector<32x32xf32> to vector<8x32xf32>
    %cst_33 = arith.constant dense<0.000000e+00> : vector<8x32xf32>
    %82 = tpu.matmul %80, %81, %cst_33 {dimension_numbers = #tpu.dot_dimension_numbers<[1], [0], [0], [1], [0, 0, 1, 1], [], []>} : vector<8x8xf32>, vector<8x32xf32>, vector<8x32xf32> -> vector<8x32xf32>
    %83 = arith.addf %65, %82 : vector<8x32xf32>
    %84 = arith.addf %66, %78 : vector<8x8xf32>
    %85 = vector.extract_strided_slice %22 {offsets = [0, 24], sizes = [8, 8], strides = [1, 1]} : vector<16x32xf32> to vector<8x8xf32>
    %86 = vector.extract_strided_slice %25 {offsets = [0, 24], sizes = [8, 8], strides = [1, 1]} : vector<16x32xf32> to vector<8x8xf32>
    %cst_34 = arith.constant dense<0.000000e+00> : vector<8x8xf32>
    %87 = tpu.matmul %85, %86, %cst_34 {dimension_numbers = #tpu.dot_dimension_numbers<[1], [1], [0], [0], [0, 0, 1, 0], [], []>} : vector<8x8xf32>, vector<8x8xf32>, vector<8x8xf32> -> vector<8x8xf32>
    %cst_35 = arith.constant dense<0xFF800000> : vector<8xf32>
    %88 = vector.multi_reduction <maximumf>, %87, %cst_35 [1] : vector<8x8xf32> to vector<8xf32>
    %89 = vector.shape_cast %88 : vector<8xf32> to vector<8x1xf32>
    %90 = vector.broadcast %89 : vector<8x1xf32> to vector<8x8xf32>
    %91 = arith.subf %87, %90 : vector<8x8xf32>
    %92 = math.exp %91 : vector<8x8xf32>
    %cst_36 = arith.constant dense<0.000000e+00> : vector<8xf32>
    %93 = vector.multi_reduction <add>, %92, %cst_36 [1] : vector<8x8xf32> to vector<8xf32>
    %94 = vector.shape_cast %93 : vector<8xf32> to vector<8x1xf32>
    %95 = vector.broadcast %94 : vector<8x1xf32> to vector<8x8xf32>
    %96 = arith.divf %92, %95 : vector<8x8xf32>
    %97 = vector.extract_strided_slice %28 {offsets = [0, 24], sizes = [8, 8], strides = [1, 1]} : vector<16x32xf32> to vector<8x8xf32>
    %cst_37 = arith.constant dense<0.000000e+00> : vector<8x8xf32>
    %98 = tpu.matmul %96, %97, %cst_37 {dimension_numbers = #tpu.dot_dimension_numbers<[1], [0], [0], [1], [0, 0, 1, 1], [], []>} : vector<8x8xf32>, vector<8x8xf32>, vector<8x8xf32> -> vector<8x8xf32>
    %99 = vector.extract_strided_slice %3 {offsets = [24, 0], sizes = [8, 32], strides = [1, 1]} : vector<32x32xf32> to vector<8x32xf32>
    %cst_38 = arith.constant dense<0.000000e+00> : vector<8x32xf32>
    %100 = tpu.matmul %98, %99, %cst_38 {dimension_numbers = #tpu.dot_dimension_numbers<[1], [0], [0], [1], [0, 0, 1, 1], [], []>} : vector<8x8xf32>, vector<8x32xf32>, vector<8x32xf32> -> vector<8x32xf32>
    %101 = arith.addf %83, %100 : vector<8x32xf32>
    %102 = arith.addf %84, %96 : vector<8x8xf32>
    %103 = vector.broadcast %7 : vector<1x32xf32> to vector<8x32xf32>
    %104 = arith.addf %101, %103 : vector<8x32xf32>
    %cst_39 = arith.constant 2.500000e-01 : f32
    %105 = vector.broadcast %cst_39 : f32 to vector<8x8xf32>
    %106 = arith.mulf %102, %105 : vector<8x8xf32>
    %cst_40 = arith.constant 0.000000e+00 : f32
    %107 = vector.broadcast %cst_40 : f32 to vector<8x32xf32>
    %cst_41 = arith.constant 0.000000e+00 : f32
    %108 = vector.broadcast %cst_41 : f32 to vector<8x8xf32>
    %109 = vector.extract_strided_slice %22 {offsets = [8, 0], sizes = [8, 8], strides = [1, 1]} : vector<16x32xf32> to vector<8x8xf32>
    %110 = vector.extract_strided_slice %25 {offsets = [8, 0], sizes = [8, 8], strides = [1, 1]} : vector<16x32xf32> to vector<8x8xf32>
    %cst_42 = arith.constant dense<0.000000e+00> : vector<8x8xf32>
    %111 = tpu.matmul %109, %110, %cst_42 {dimension_numbers = #tpu.dot_dimension_numbers<[1], [1], [0], [0], [0, 0, 1, 0], [], []>} : vector<8x8xf32>, vector<8x8xf32>, vector<8x8xf32> -> vector<8x8xf32>
    %cst_43 = arith.constant dense<0xFF800000> : vector<8xf32>
    %112 = vector.multi_reduction <maximumf>, %111, %cst_43 [1] : vector<8x8xf32> to vector<8xf32>
    %113 = vector.shape_cast %112 : vector<8xf32> to vector<8x1xf32>
    %114 = vector.broadcast %113 : vector<8x1xf32> to vector<8x8xf32>
    %115 = arith.subf %111, %114 : vector<8x8xf32>
    %116 = math.exp %115 : vector<8x8xf32>
    %cst_44 = arith.constant dense<0.000000e+00> : vector<8xf32>
    %117 = vector.multi_reduction <add>, %116, %cst_44 [1] : vector<8x8xf32> to vector<8xf32>
    %118 = vector.shape_cast %117 : vector<8xf32> to vector<8x1xf32>
    %119 = vector.broadcast %118 : vector<8x1xf32> to vector<8x8xf32>
    %120 = arith.divf %116, %119 : vector<8x8xf32>
    %121 = vector.extract_strided_slice %28 {offsets = [8, 0], sizes = [8, 8], strides = [1, 1]} : vector<16x32xf32> to vector<8x8xf32>
    %cst_45 = arith.constant dense<0.000000e+00> : vector<8x8xf32>
    %122 = tpu.matmul %120, %121, %cst_45 {dimension_numbers = #tpu.dot_dimension_numbers<[1], [0], [0], [1], [0, 0, 1, 1], [], []>} : vector<8x8xf32>, vector<8x8xf32>, vector<8x8xf32> -> vector<8x8xf32>
    %123 = vector.extract_strided_slice %3 {offsets = [0, 0], sizes = [8, 32], strides = [1, 1]} : vector<32x32xf32> to vector<8x32xf32>
    %cst_46 = arith.constant dense<0.000000e+00> : vector<8x32xf32>
    %124 = tpu.matmul %122, %123, %cst_46 {dimension_numbers = #tpu.dot_dimension_numbers<[1], [0], [0], [1], [0, 0, 1, 1], [], []>} : vector<8x8xf32>, vector<8x32xf32>, vector<8x32xf32> -> vector<8x32xf32>
    %125 = arith.addf %107, %124 : vector<8x32xf32>
    %126 = arith.addf %108, %120 : vector<8x8xf32>
    %127 = vector.extract_strided_slice %22 {offsets = [8, 8], sizes = [8, 8], strides = [1, 1]} : vector<16x32xf32> to vector<8x8xf32>
    %128 = vector.extract_strided_slice %25 {offsets = [8, 8], sizes = [8, 8], strides = [1, 1]} : vector<16x32xf32> to vector<8x8xf32>
    %cst_47 = arith.constant dense<0.000000e+00> : vector<8x8xf32>
    %129 = tpu.matmul %127, %128, %cst_47 {dimension_numbers = #tpu.dot_dimension_numbers<[1], [1], [0], [0], [0, 0, 1, 0], [], []>} : vector<8x8xf32>, vector<8x8xf32>, vector<8x8xf32> -> vector<8x8xf32>
    %cst_48 = arith.constant dense<0xFF800000> : vector<8xf32>
    %130 = vector.multi_reduction <maximumf>, %129, %cst_48 [1] : vector<8x8xf32> to vector<8xf32>
    %131 = vector.shape_cast %130 : vector<8xf32> to vector<8x1xf32>
    %132 = vector.broadcast %131 : vector<8x1xf32> to vector<8x8xf32>
    %133 = arith.subf %129, %132 : vector<8x8xf32>
    %134 = math.exp %133 : vector<8x8xf32>
    %cst_49 = arith.constant dense<0.000000e+00> : vector<8xf32>
    %135 = vector.multi_reduction <add>, %134, %cst_49 [1] : vector<8x8xf32> to vector<8xf32>
    %136 = vector.shape_cast %135 : vector<8xf32> to vector<8x1xf32>
    %137 = vector.broadcast %136 : vector<8x1xf32> to vector<8x8xf32>
    %138 = arith.divf %134, %137 : vector<8x8xf32>
    %139 = vector.extract_strided_slice %28 {offsets = [8, 8], sizes = [8, 8], strides = [1, 1]} : vector<16x32xf32> to vector<8x8xf32>
    %cst_50 = arith.constant dense<0.000000e+00> : vector<8x8xf32>
    %140 = tpu.matmul %138, %139, %cst_50 {dimension_numbers = #tpu.dot_dimension_numbers<[1], [0], [0], [1], [0, 0, 1, 1], [], []>} : vector<8x8xf32>, vector<8x8xf32>, vector<8x8xf32> -> vector<8x8xf32>
    %141 = vector.extract_strided_slice %3 {offsets = [8, 0], sizes = [8, 32], strides = [1, 1]} : vector<32x32xf32> to vector<8x32xf32>
    %cst_51 = arith.constant dense<0.000000e+00> : vector<8x32xf32>
    %142 = tpu.matmul %140, %141, %cst_51 {dimension_numbers = #tpu.dot_dimension_numbers<[1], [0], [0], [1], [0, 0, 1, 1], [], []>} : vector<8x8xf32>, vector<8x32xf32>, vector<8x32xf32> -> vector<8x32xf32>
    %143 = arith.addf %125, %142 : vector<8x32xf32>
    %144 = arith.addf %126, %138 : vector<8x8xf32>
    %145 = vector.extract_strided_slice %22 {offsets = [8, 16], sizes = [8, 8], strides = [1, 1]} : vector<16x32xf32> to vector<8x8xf32>
    %146 = vector.extract_strided_slice %25 {offsets = [8, 16], sizes = [8, 8], strides = [1, 1]} : vector<16x32xf32> to vector<8x8xf32>
    %cst_52 = arith.constant dense<0.000000e+00> : vector<8x8xf32>
    %147 = tpu.matmul %145, %146, %cst_52 {dimension_numbers = #tpu.dot_dimension_numbers<[1], [1], [0], [0], [0, 0, 1, 0], [], []>} : vector<8x8xf32>, vector<8x8xf32>, vector<8x8xf32> -> vector<8x8xf32>
    %cst_53 = arith.constant dense<0xFF800000> : vector<8xf32>
    %148 = vector.multi_reduction <maximumf>, %147, %cst_53 [1] : vector<8x8xf32> to vector<8xf32>
    %149 = vector.shape_cast %148 : vector<8xf32> to vector<8x1xf32>
    %150 = vector.broadcast %149 : vector<8x1xf32> to vector<8x8xf32>
    %151 = arith.subf %147, %150 : vector<8x8xf32>
    %152 = math.exp %151 : vector<8x8xf32>
    %cst_54 = arith.constant dense<0.000000e+00> : vector<8xf32>
    %153 = vector.multi_reduction <add>, %152, %cst_54 [1] : vector<8x8xf32> to vector<8xf32>
    %154 = vector.shape_cast %153 : vector<8xf32> to vector<8x1xf32>
    %155 = vector.broadcast %154 : vector<8x1xf32> to vector<8x8xf32>
    %156 = arith.divf %152, %155 : vector<8x8xf32>
    %157 = vector.extract_strided_slice %28 {offsets = [8, 16], sizes = [8, 8], strides = [1, 1]} : vector<16x32xf32> to vector<8x8xf32>
    %cst_55 = arith.constant dense<0.000000e+00> : vector<8x8xf32>
    %158 = tpu.matmul %156, %157, %cst_55 {dimension_numbers = #tpu.dot_dimension_numbers<[1], [0], [0], [1], [0, 0, 1, 1], [], []>} : vector<8x8xf32>, vector<8x8xf32>, vector<8x8xf32> -> vector<8x8xf32>
    %159 = vector.extract_strided_slice %3 {offsets = [16, 0], sizes = [8, 32], strides = [1, 1]} : vector<32x32xf32> to vector<8x32xf32>
    %cst_56 = arith.constant dense<0.000000e+00> : vector<8x32xf32>
    %160 = tpu.matmul %158, %159, %cst_56 {dimension_numbers = #tpu.dot_dimension_numbers<[1], [0], [0], [1], [0, 0, 1, 1], [], []>} : vector<8x8xf32>, vector<8x32xf32>, vector<8x32xf32> -> vector<8x32xf32>
    %161 = arith.addf %143, %160 : vector<8x32xf32>
    %162 = arith.addf %144, %156 : vector<8x8xf32>
    %163 = vector.extract_strided_slice %22 {offsets = [8, 24], sizes = [8, 8], strides = [1, 1]} : vector<16x32xf32> to vector<8x8xf32>
    %164 = vector.extract_strided_slice %25 {offsets = [8, 24], sizes = [8, 8], strides = [1, 1]} : vector<16x32xf32> to vector<8x8xf32>
    %cst_57 = arith.constant dense<0.000000e+00> : vector<8x8xf32>
    %165 = tpu.matmul %163, %164, %cst_57 {dimension_numbers = #tpu.dot_dimension_numbers<[1], [1], [0], [0], [0, 0, 1, 0], [], []>} : vector<8x8xf32>, vector<8x8xf32>, vector<8x8xf32> -> vector<8x8xf32>
    %cst_58 = arith.constant dense<0xFF800000> : vector<8xf32>
    %166 = vector.multi_reduction <maximumf>, %165, %cst_58 [1] : vector<8x8xf32> to vector<8xf32>
    %167 = vector.shape_cast %166 : vector<8xf32> to vector<8x1xf32>
    %168 = vector.broadcast %167 : vector<8x1xf32> to vector<8x8xf32>
    %169 = arith.subf %165, %168 : vector<8x8xf32>
    %170 = math.exp %169 : vector<8x8xf32>
    %cst_59 = arith.constant dense<0.000000e+00> : vector<8xf32>
    %171 = vector.multi_reduction <add>, %170, %cst_59 [1] : vector<8x8xf32> to vector<8xf32>
    %172 = vector.shape_cast %171 : vector<8xf32> to vector<8x1xf32>
    %173 = vector.broadcast %172 : vector<8x1xf32> to vector<8x8xf32>
    %174 = arith.divf %170, %173 : vector<8x8xf32>
    %175 = vector.extract_strided_slice %28 {offsets = [8, 24], sizes = [8, 8], strides = [1, 1]} : vector<16x32xf32> to vector<8x8xf32>
    %cst_60 = arith.constant dense<0.000000e+00> : vector<8x8xf32>
    %176 = tpu.matmul %174, %175, %cst_60 {dimension_numbers = #tpu.dot_dimension_numbers<[1], [0], [0], [1], [0, 0, 1, 1], [], []>} : vector<8x8xf32>, vector<8x8xf32>, vector<8x8xf32> -> vector<8x8xf32>
    %177 = vector.extract_strided_slice %3 {offsets = [24, 0], sizes = [8, 32], strides = [1, 1]} : vector<32x32xf32> to vector<8x32xf32>
    %cst_61 = arith.constant dense<0.000000e+00> : vector<8x32xf32>
    %178 = tpu.matmul %176, %177, %cst_61 {dimension_numbers = #tpu.dot_dimension_numbers<[1], [0], [0], [1], [0, 0, 1, 1], [], []>} : vector<8x8xf32>, vector<8x32xf32>, vector<8x32xf32> -> vector<8x32xf32>
    %179 = arith.addf %161, %178 : vector<8x32xf32>
    %180 = arith.addf %162, %174 : vector<8x8xf32>
    %181 = vector.broadcast %7 : vector<1x32xf32> to vector<8x32xf32>
    %182 = arith.addf %179, %181 : vector<8x32xf32>
    %cst_62 = arith.constant 2.500000e-01 : f32
    %183 = vector.broadcast %cst_62 : f32 to vector<8x8xf32>
    %184 = arith.mulf %180, %183 : vector<8x8xf32>
    %185 = tpu.concatenate %104, %182 in 1 : vector<8x32xf32>, vector<8x32xf32> -> vector<8x64xf32>
    %c0_63 = arith.constant 0 : index
    %c0_64 = arith.constant 0 : index
    %186 = vector.load %arg6[%c0_63, %c0_64] : memref<8x64xf32, #tpu.memory_space<vmem>>, vector<8x64xf32>
    tpu.vector_store %arg6[%c0_63, %c0_64], %185 {strides = array<i32>} : memref<8x64xf32, #tpu.memory_space<vmem>>, vector<8x64xf32>,
    %187 = vector.shape_cast %106 : vector<8x8xf32> to vector<1x8x8xf32>
    %188 = vector.shape_cast %184 : vector<8x8xf32> to vector<1x8x8xf32>
    %189 = tpu.concatenate %187, %188 in 0 : vector<1x8x8xf32>, vector<1x8x8xf32> -> vector<2x8x8xf32>
    %c0_65 = arith.constant 0 : index
    %c0_66 = arith.constant 0 : index
    %c0_67 = arith.constant 0 : index
    %190 = vector.load %arg7[%c0_65, %c0_66, %c0_67] : memref<2x8x8xf32, #tpu.memory_space<vmem>>, vector<2x8x8xf32>
    tpu.vector_store %arg7[%c0_65, %c0_66, %c0_67], %189 {strides = array<i32>} : memref<2x8x8xf32, #tpu.memory_space<vmem>>, vector<2x8x8xf32>,
    return
  }
  func.func @transform_0(%arg0: i32) -> (i32, i32) {
    %c0_i32 = arith.constant 0 : i32
    %c0_i32_0 = arith.constant 0 : i32
    %c0_i32_1 = arith.constant 0 : i32
    return %c0_i32, %c0_i32_0 : i32, i32
  }
  func.func @transform_1(%arg0: i32) -> (i32, i32) {
    %c0_i32 = arith.constant 0 : i32
    %c0_i32_0 = arith.constant 0 : i32
    %c0_i32_1 = arith.constant 0 : i32
    return %c0_i32, %c0_i32_0 : i32, i32
  }
  func.func @transform_2(%arg0: i32) -> (i32, i32) {
    %c0_i32 = arith.constant 0 : i32
    %c0_i32_0 = arith.constant 0 : i32
    %c0_i32_1 = arith.constant 0 : i32
    return %c0_i32, %c0_i32_0 : i32, i32
  }
  func.func @transform_3(%arg0: i32) -> (i32, i32) {
    %c0_i32 = arith.constant 0 : i32
    %c0_i32_0 = arith.constant 0 : i32
    %c0_i32_1 = arith.constant 0 : i32
    return %c0_i32, %c0_i32_0 : i32, i32
  }
  func.func @transform_4(%arg0: i32) -> (i32, i32) {
    %c0_i32 = arith.constant 0 : i32
    %c0_i32_0 = arith.constant 0 : i32
    %c0_i32_1 = arith.constant 0 : i32
    return %c0_i32, %c0_i32_0 : i32, i32
  }
  func.func @transform_5(%arg0: i32) -> (i32, i32) {
    %c0_i32 = arith.constant 0 : i32
    %c0_i32_0 = arith.constant 0 : i32
    %c0_i32_1 = arith.constant 0 : i32
    return %c0_i32, %c0_i32_0 : i32, i32
  }
  func.func @transform_6(%arg0: i32) -> (i32, i32, i32) {
    %c0_i32 = arith.constant 0 : i32
    %c0_i32_0 = arith.constant 0 : i32
    %c0_i32_1 = arith.constant 0 : i32
    %c0_i32_2 = arith.constant 0 : i32
    return %c0_i32, %c0_i32_0, %c0_i32_1 : i32, i32, i32
  }
}

</mosaic_0001>

<bundles_post_ra>
// kernel: my_multihead_attention.1
= control target key start
LH: loop header
LB: loop body
LE: loop exit
PB: predicated region body
PF: predicated region fallthrough
CT: control target
= control target key end

     0   :  { %vm58_vm0 = vcmask 261120   ;;  %s1377_s0 = inlined_call_operand.vmem [shape: f32[8,64], index: 0, kind: input, shape index: {}]   ;;  %s1378_s1 = inlined_call_operand.vmem [shape: f32[8,64], index: 1, kind: input, shape index: {}]   ;;  %s1379_s2 = inlined_call_operand.vmem [shape: f32[8,96], index: 2, kind: input, shape index: {}]   ;;  %s1380_s3 = inlined_call_operand.vmem [shape: f32[144,32], index: 3, kind: input, shape index: {}]   ;;  %s1381_s4 = inlined_call_operand.vmem [shape: f32[4,32], index: 4, kind: input, shape index: {}]   ;;  %s1382_s5 = inlined_call_operand.vmem [shape: f32[8,64], index: 5, kind: output, shape index: {0}]   ;;  %s1383_s6 = inlined_call_operand.hbm [shape: f32[2,8,8], index: 6, kind: output, shape index: {1}]  }
   0x1   :  { %v30_v0 = vld [vmem:[%s1380_s3 + $0x38] sm:$0xff]  ;;  %v29_v1 = vld [vmem:[%s1380_s3 + $0x30] sm:$0xff]  ;;  %v28_v4 = vld [vmem:[%s1380_s3 + $0x28] sm:$0xff] }
   0x2   :  { %v26_v2 = vld [vmem:[%s1380_s3 + $0x18] sm:$0xff]  ;;  %103 = vmatpush.msra.mxu1 %v30_v0  ;;  %v25_v3 = vld [vmem:[%s1380_s3 + $0x10] sm:$0xff]  ;;  %v24_v5 = vld [vmem:[%s1380_s3 + $0x8] sm:$0xff] }
   0x3   :  { %75 = vmatpush.msra.mxu0 %v26_v2  ;;  %v36_v6 = vld [vmem:[%s1380_s3 + $0x68] sm:$0xff]  ;;  %v35_v7 = vld [vmem:[%s1380_s3 + $0x60] sm:$0xff]  ;;  %v34_v12 = vld [vmem:[%s1380_s3 + $0x58] sm:$0xff] }
   0x4   :  { %104 = vmatpush.msra.mxu1 %v29_v1  ;;  %v27_v8 = vld [vmem:[%s1380_s3 + $0x20] sm:$0xff]  ;;  %130 = vmatpush.msra.mxu2 %v36_v6  ;;  %v33_v13 = vld [vmem:[%s1380_s3 + $0x50] sm:$0xff] }
   0x5   :  { %76 = vmatpush.msra.mxu0 %v25_v3  ;;  %v23_v9 = vld [vmem:[%s1380_s3] sm:$0xff] }
   0x6   :  { %105 = vmatpush.msra.mxu1 %v28_v4  ;;  %v1178_v10 = vld [vmem:[%s1378_s1] sm:$0xff]  ;;  %131 = vmatpush.msra.mxu2 %v35_v7 }
   0x7   :  { %77 = vmatpush.msra.mxu0 %v24_v5  ;;  %v1183_v11 = vld [vmem:[%s1377_s0] sm:$0xff] }
   0x8   :  { %106 = vmatpush.msra.mxu1 %v27_v8 }
   0x9   :  { %78 = vmatpush.msra.mxu0 %v23_v9  ;;  %994 = vmatmul.msk.f32.vlgmr.msra.gmra.mxu1 %vm58_vm0, %v1178_v10 }
   0xa   :  { %992 = vmatmul.msk.f32.vlgmr.msra.gmra.mxu0 %vm58_vm0, %v1183_v11 }
   0xb   :  { %12 = vsyncpa [#allocation3], 0  ;;  %132 = vmatpush.msra.mxu2 %v34_v12  ;;  %v32_v14 = vld [vmem:[%s1380_s3 + $0x48] sm:$0xff]  ;;  %v31_v15 = vld [vmem:[%s1380_s3 + $0x40] sm:$0xff]  ;;  %vm115_vm1 = vcmask 392192   ;;  %vm143_vm2 = vcmask 64512  }
   0xc   :  { %v1204_v16 = vld [vmem:[%s1379_s2] sm:$0xff]  ;;  %s1101_s2 = smov 112   ;;  %s1102_s9 = smov 120   ;;  %v1276_v3 = vld [vmem:[%s1380_s3 + $0x70] sm:$0xff] }
   0xd   :  { %133 = vmatpush.msra.mxu2 %v33_v13  ;;  %v1211_v17 = vld [vmem:[%s1381_s4 + $0x1] ss:$0 sm:$0xff]  ;;  %v1216_v18 = vld [vmem:[%s1381_s4] ss:$0 sm:$0xff]  ;;  %v1239_v23 = vld [vmem:[%s1381_s4 + $0x2] ss:$0 sm:$0xff] }
   0xe   :  { %s1103_s12 = smov 96   ;;  %s1104_s13 = smov 80  }
   0xf   :  { %134 = vmatpush.msra.mxu2 %v32_v14  ;;  %s1105_s14 = smov 104   ;;  %s978_s24 = sshll.u32 %s1383_s6, 4  ;;  %s979_s24 = int_to_ptr.hbm [resolvable:$true] %s978_s24 }
  0x10   :  { %s1107_s25 = smov 128   ;;  %s1108_s26 = smov 8  }
  0x11   :  { %135 = vmatpush.msra.mxu2 %v31_v15  ;;  %s1109_s29 = smov 32  }
  0x12   :  { %996 = vmatmul.msk.f32.vlgmr.msra.gmra.mxu2 %vm115_vm1, %v1204_v16 }
  0x13   :  { %338 = vmatpush.msrb.mxu2 %v1276_v3 }
  0x86   :  { %v108_v19 = vpop.f32.mrf.mxu1 }
  0x87   :  { %v80_v20 = vpop.f32.mrf.mxu0  ;;  %v1219_v21 = vadd.f32 %v1211_v17, %v108_v19 }
  0x88   :  { %v1226_v22 = vadd.f32 %v1216_v18, %v80_v20 }
  0x89   :  { %346 = vrot.lane.b32.xlu2 %v1219_v21, %s1101_s2  ;;  %220 = vrot.lane.b32.xlu1 %v1219_v21, %s1102_s9 }
  0x8a   :  { %998 = vmatpush.xpose.msk.msra.mxu3 %vm143_vm2, %v1219_v21 }
  0x8d   :  { %999 = vmatmul.msk.f32.vlgmr.msra.gmra.mxu3 %vm143_vm2, %v1226_v22 }
  0x91   :  { %344 = vrot.lane.b32.xlu2 %v1226_v22, %s1101_s2  ;;  %218 = vrot.lane.b32.xlu1 %v1226_v22, %s1102_s9 }
  0x95   :  { %v137_v24 = vpop.f32.mrf.mxu2 }
  0x96   :  { %v1242_v25 = vadd.f32 %v1239_v23, %v137_v24 }
  0x98   :  { %212 = vmatpush.msrb.mxu3 %v1242_v25 }
  0xe3   :  { %v347_v46 = vpop.permute.xlu2 %346 }
  0xeb   :  { %v345_v48 = vpop.permute.xlu2 %344 }
  0xfb   :  { %v221_v26 = vpop.permute.xlu1 %220 }
  0xfc   :  { %1001 = vmatpush.xpose.msk.msra.mxu3 %vm143_vm2, %v221_v26 }
 0x103   :  { %v219_v47 = vpop.permute.xlu1 %218 }
 0x110   :  { %v167_v27 = vpop.f32.mrf.mxu3 }
 0x111   :  { %v170_v28 = vsel %vm143_vm2, %v167_v27, -inf }
 0x112   :  { %171 = vmax.xlane.f32.xlu0 %v170_v28 }
 0x185   :  { %v172_v29 = vpop.xlane.xlu0 %171 }
 0x186   :  { %v173_v30 = vsub.f32 %v167_v27, %v172_v29 }
 0x188   :  { %v174_v31 = vmul.f32 1.442695, %v173_v30 }
 0x18a   :  { %1043 = vpow2.f32 %v174_v31 }
 0x190   :  { %v1044_v32 = vpop.eup %1043 }
 0x191   :  { %v176_v33 = vsel %vm143_vm2, %v1044_v32, 0.0 }
 0x192   :  { %177 = vadd.xlane.f32.xlu0 %v176_v33 }
 0x205   :  { %v178_v34 = vpop.xlane.xlu0 %177 }
 0x206   :  { %1045 = vrcp.f32 %v178_v34  ;;  %v190_v38 = vand.u32 2147483648, %v178_v34  ;;  %v188_v40 = vand.u32 2147483647, %v178_v34  ;;  %vm184_vm4 = vweird.f32 %v178_v34 }
 0x208   :  { %v191_v42 = vor.u32 1.1754944e-38, %v190_v38  ;;  %vm189_vm6 = vcmp.eq.f32.partialorder %v188_v40, 8.507059e+37  ;;  %v38_v38 = vld [vmem:[%s1380_s3 + $0x78] sm:$0xff] }
 0x209   :  { %315 = vmatpush.msrb.mxu1 %v38_v38 }
 0x20c   :  { %v1046_v35 = vpop.eup %1045 }
 0x20d   :  { %v180_v36 = vmul.f32 %v1046_v35, %v178_v34  ;;  %vm185_vm3 = vweird.f32 %v1046_v35 }
 0x20e   :  { %vm186_vm5 = vmor %vm184_vm4, %vm185_vm3 }
 0x20f   :  { %v181_v37 = vsub.f32 1.0, %v180_v36 }
 0x211   :  { %v182_v39 = vmul.f32 %v1046_v35, %v181_v37 }
 0x213   :  { %v183_v41 = vadd.f32 %v1046_v35, %v182_v39  ;;  %v39_v39 = vld [vmem:[%s1380_s3 + $0x80] sm:$0xff] }
 0x214   :  { %440 = vmatpush.msra.mxu1 %v39_v39 }
 0x215   :  { %v187_v43 = vsel %vm186_vm5, %v1046_v35, %v183_v41 }
 0x216   :  { %v192_v44 = vsel %vm189_vm6, %v191_v42, %v187_v43 }
 0x217   :  { %v1248_v45 = vmul.f32 %v1044_v32, %v192_v44 }
 0x219   :  { %1000 = vmatmul.msk.f32.vlgmr.msrb.gmra.mxu3 %vm143_vm2, %v1248_v45 }
 0x21a   :  { %1006 = vmatpush.xpose.msk.msrb.mxu3 %vm143_vm2, %v347_v46 }
 0x221   :  { %1002 = vmatmul.msk.f32.vlgmr.msra.gmra.mxu3 %vm143_vm2, %v219_v47 }
 0x229   :  { %1007 = vmatmul.msk.f32.vlgmr.msrb.gmra.mxu3 %vm143_vm2, %v345_v48 }
 0x29c   :  { %v1255_v49 = vpop.f32.mrf.mxu3 }
 0x2a4   :  { %v243_v50 = vpop.f32.mrf.mxu3 }
 0x2a5   :  { %v246_v51 = vsel %vm143_vm2, %v243_v50, -inf }
 0x2a6   :  { %247 = vmax.xlane.f32.xlu0 %v246_v51 }
 0x2ac   :  { %v369_v52 = vpop.f32.mrf.mxu3 }
 0x2ad   :  { %v372_v53 = vsel %vm143_vm2, %v369_v52, -inf }
 0x2ae   :  { %373 = vmax.xlane.f32.xlu1 %v372_v53 }
 0x2ba   :  { %49 = vrot.lane.b32.xlu0 %v1183_v11, %s1103_s12 }
 0x2c7   :  { %52 = vrot.lane.b32.xlu1 %v1178_v10, %s1103_s12 }
 0x319   :  { %v248_v54 = vpop.xlane.xlu0 %247 }
 0x31a   :  { %v249_v55 = vsub.f32 %v243_v50, %v248_v54 }
 0x31c   :  { %v250_v56 = vmul.f32 1.442695, %v249_v55 }
 0x31e   :  { %1047 = vpow2.f32 %v250_v56 }
 0x321   :  { %v374_v57 = vpop.xlane.xlu1 %373 }
 0x322   :  { %v375_v58 = vsub.f32 %v369_v52, %v374_v57 }
 0x324   :  { %v1048_v59 = vpop.eup %1047  ;;  %v376_v60 = vmul.f32 1.442695, %v375_v58 }
 0x325   :  { %v252_v61 = vsel %vm143_vm2, %v1048_v59, 0.0 }
 0x326   :  { %1049 = vpow2.f32 %v376_v60  ;;  %253 = vadd.xlane.f32.xlu2 %v252_v61 }
 0x32c   :  { %v1050_v62 = vpop.eup %1049  ;;  %v50_v0 = vpop.permute.xlu0 %49 }
 0x32d   :  { %v378_v63 = vsel %vm143_vm2, %v1050_v62, 0.0  ;;  %993 = vmatmul.msk.f32.gmra.mxu0 %vm58_vm0, %v50_v0 }
 0x32e   :  { %379 = vadd.xlane.f32.xlu0 %v378_v63 }
 0x339   :  { %v53_v2 = vpop.permute.xlu1 %52 }
 0x33a   :  { %995 = vmatmul.msk.f32.gmra.mxu1 %vm58_vm0, %v53_v2 }
 0x33e   :  { %396 = vrot.lane.b32.xlu2 %v1242_v25, %s1101_s2 }
 0x342   :  { %271 = vrot.lane.b32.xlu0 %v1242_v25, %s1102_s9 }
 0x34a   :  { %55 = vrot.lane.b32.xlu0 %v1204_v16, %s1104_s13 }
 0x352   :  { %449 = vrot.lane.b32.xlu0 %v1219_v21, %s1105_s14 }
 0x35a   :  { %447 = vrot.lane.b32.xlu0 %v1226_v22, %s1105_s14 }
 0x399   :  { %v254_v1 = vpop.xlane.xlu2 %253 }
 0x39a   :  { %1051 = vrcp.f32 %v254_v1  ;;  %v266_v9 = vand.u32 2147483648, %v254_v1  ;;  %vm260_vm8 = vweird.f32 %v254_v1  ;;  %v264_v11 = vand.u32 2147483647, %v254_v1 }
 0x39c   :  { %v267_v15 = vor.u32 1.1754944e-38, %v266_v9  ;;  %vm265_vm10 = vcmp.eq.f32.partialorder %v264_v11, 8.507059e+37 }
 0x3a0   :  { %v1052_v4 = vpop.eup %1051 }
 0x3a1   :  { %v256_v5 = vmul.f32 %v1052_v4, %v254_v1  ;;  %v380_v6 = vpop.xlane.xlu0 %379  ;;  %vm261_vm7 = vweird.f32 %v1052_v4  ;;  %v397_v34 = vpop.permute.xlu2 %396 }
 0x3a2   :  { %1053 = vrcp.f32 %v380_v6  ;;  %vm262_vm9 = vmor %vm260_vm8, %vm261_vm7  ;;  %v392_v19 = vand.u32 2147483648, %v380_v6  ;;  %v390_v22 = vand.u32 2147483647, %v380_v6  ;;  %vm386_vm12 = vweird.f32 %v380_v6 }
 0x3a3   :  { %v257_v7 = vsub.f32 1.0, %v256_v5 }
 0x3a4   :  { %v393_v27 = vor.u32 1.1754944e-38, %v392_v19  ;;  %vm391_vm14 = vcmp.eq.f32.partialorder %v390_v22, 8.507059e+37 }
 0x3a5   :  { %v258_v8 = vmul.f32 %v1052_v4, %v257_v7 }
 0x3a7   :  { %v259_v10 = vadd.f32 %v1052_v4, %v258_v8 }
 0x3a8   :  { %v1054_v12 = vpop.eup %1053 }
 0x3a9   :  { %v382_v13 = vmul.f32 %v1054_v12, %v380_v6  ;;  %v263_v14 = vsel %vm262_vm9, %v1052_v4, %v259_v10  ;;  %vm387_vm11 = vweird.f32 %v1054_v12 }
 0x3aa   :  { %v268_v20 = vsel %vm265_vm10, %v267_v15, %v263_v14  ;;  %vm388_vm13 = vmor %vm386_vm12, %vm387_vm11  ;;  %v83_v40 = vpop.f32.mrf.mxu0 }
 0x3ab   :  { %v383_v16 = vsub.f32 1.0, %v382_v13  ;;  %v269_v26 = vmul.f32 %v1048_v59, %v268_v20  ;;  %v84_v47 = vadd.f32 %v1216_v18, %v83_v40 }
 0x3ad   :  { %v384_v21 = vmul.f32 %v1054_v12, %v383_v16  ;;  %v343_v31 = vadd.f32 %v269_v26, %v1248_v45 }
 0x3af   :  { %v385_v24 = vadd.f32 %v1054_v12, %v384_v21 }
 0x3b1   :  { %v389_v28 = vsel %vm388_vm13, %v1054_v12, %v385_v24 }
 0x3b2   :  { %v394_v29 = vsel %vm391_vm14, %v393_v27, %v389_v28 }
 0x3b3   :  { %v395_v30 = vmul.f32 %v1050_v62, %v394_v29 }
 0x3b4   :  { %v272_v32 = vpop.permute.xlu0 %271 }
 0x3b5   :  { %292 = vmatpush.msrb.mxu0 %v272_v32  ;;  %v1281_v33 = vadd.f32 %v395_v30, %v343_v31 }
 0x3b6   :  { %1003 = vmatmul.msk.f32.vlgmr.msrb.gmra.mxu0 %vm143_vm2, %v269_v26 }
 0x3b7   :  { %417 = vmatpush.msra.mxu0 %v397_v34  ;;  %v111_v41 = vpop.f32.mrf.mxu1 }
 0x3b8   :  { %v112_v42 = vadd.f32 %v1211_v17, %v111_v41 }
 0x3bc   :  { %v56_v35 = vpop.permute.xlu0 %55 }
 0x3bd   :  { %997 = vmatmul.msk.f32.gmra.mxu2 %vm115_vm1, %v56_v35  ;;  %v1336_v35 = vld [vmem:[%s1380_s3 + $0x88] sm:$0xff]  ;;  %s1106_s3 = smov [#allocation2]  }
 0x3be   :  { %1008 = vmatmul.msk.f32.vlgmr.msra.gmra.mxu0 %vm143_vm2, %v395_v30  ;;  %s976_s1 = sshll.u32 %s1106_s3, 4  ;;  %s977_s1 = int_to_ptr.vmem [resolvable:$true] %s976_s1 }
 0x3bf   :  { %543 = vmatpush.msrb.mxu0 %v1336_v35 }
 0x3c4   :  { %v450_v36 = vpop.permute.xlu0 %449 }
 0x3c5   :  { %1005 = vmatmul.msk.f32.vlgmr.msrb.gmra.mxu2 %vm143_vm2, %v1255_v49 }
 0x3c6   :  { %1010 = vmatpush.xpose.msk.msra.mxu2 %vm143_vm2, %v450_v36 }
 0x3cc   :  { %v448_v37 = vpop.permute.xlu0 %447 }
 0x3cd   :  { %1011 = vmatmul.msk.f32.vlgmr.msra.gmra.mxu2 %vm143_vm2, %v448_v37 }
 0x433   :  { %v294_v43 = vpop.f32.mrf.mxu0 }
 0x434   :  { %1004 = vmatmul.msk.f32.vlgmr.msrb.gmra.mxu1 %vm143_vm2, %v294_v43 }
 0x435   :  { %1014 = vmatpush.xpose.msk.msrb.mxu1 %vm143_vm2, %v112_v42 }
 0x43b   :  { %v419_v44 = vpop.f32.mrf.mxu0 }
 0x43c   :  { %1009 = vmatmul.msk.f32.vlgmr.msra.gmra.mxu1 %vm143_vm2, %v419_v44 }
 0x43d   :  { %724 = vmatpush.msra.mxu1 %v38_v38 }
 0x440   :  { %v140_v45 = vpop.f32.mrf.mxu2 }
 0x441   :  { %v1301_v46 = vadd.f32 %v1239_v23, %v140_v45 }
 0x443   :  { %621 = vmatpush.msrb.mxu2 %v1301_v46 }
 0x444   :  { %1015 = vmatmul.msk.f32.vlgmr.msrb.gmra.mxu1 %vm143_vm2, %v84_v47 }
 0x445   :  { %747 = vmatpush.msra.mxu2 %v1276_v3  ;;  %849 = vmatpush.msrb.mxu1 %v39_v39 }
 0x448   :  { %v340_v17 = vpop.f32.mrf.mxu2 }
 0x450   :  { %v472_v48 = vpop.f32.mrf.mxu2 }
 0x451   :  { %v475_v49 = vsel %vm143_vm2, %v472_v48, -inf }
 0x452   :  { %476 = vmax.xlane.f32.xlu0 %v475_v49 }
 0x466   :  { %629 = vrot.lane.b32.xlu0 %v112_v42, %s1102_s9 }
 0x46e   :  { %858 = vrot.lane.b32.xlu0 %v112_v42, %s1105_s14 }
 0x476   :  { %755 = vrot.lane.b32.xlu0 %v112_v42, %s1101_s2 }
 0x4b1   :  { %v317_v23 = vpop.f32.mrf.mxu1 }
 0x4b2   :  { %v341_v18 = vadd.f32 %v340_v17, %v317_v23 }
 0x4b9   :  { %v442_v50 = vpop.f32.mrf.mxu1 }
 0x4ba   :  { %v1311_v51 = vadd.f32 %v442_v50, %v341_v18 }
 0x4c1   :  { %v576_v52 = vpop.f32.mrf.mxu1 }
 0x4c2   :  { %v579_v53 = vsel %vm143_vm2, %v576_v52, -inf }
 0x4c3   :  { %580 = vmax.xlane.f32.xlu2 %v579_v53 }
 0x4c5   :  { %v477_v54 = vpop.xlane.xlu0 %476 }
 0x4c6   :  { %v478_v55 = vsub.f32 %v472_v48, %v477_v54 }
 0x4c8   :  { %v479_v56 = vmul.f32 1.442695, %v478_v55 }
 0x4ca   :  { %1055 = vpow2.f32 %v479_v56 }
 0x4d0   :  { %v1056_v57 = vpop.eup %1055 }
 0x4d1   :  { %v481_v58 = vsel %vm143_vm2, %v1056_v57, 0.0 }
 0x4d2   :  { %482 = vadd.xlane.f32.xlu2 %v481_v58 }
 0x4d8   :  { %v630_v16 = vpop.permute.xlu0 %629 }
 0x4ea   :  { %627 = vrot.lane.b32.xlu2 %v84_v47, %s1102_s9 }
 0x4f2   :  { %753 = vrot.lane.b32.xlu2 %v84_v47, %s1101_s2 }
 0x536   :  { %v581_v59 = vpop.xlane.xlu2 %580 }
 0x537   :  { %v582_v60 = vsub.f32 %v576_v52, %v581_v59 }
 0x539   :  { %v583_v61 = vmul.f32 1.442695, %v582_v60 }
 0x53b   :  { %1057 = vpow2.f32 %v583_v61 }
 0x541   :  { %v1058_v62 = vpop.eup %1057 }
 0x542   :  { %v585_v63 = vsel %vm143_vm2, %v1058_v62, 0.0 }
 0x543   :  { %586 = vadd.xlane.f32.xlu1 %v585_v63 }
 0x545   :  { %v483_v0 = vpop.xlane.xlu2 %482 }
 0x546   :  { %1059 = vrcp.f32 %v483_v0  ;;  %v495_v4 = vand.u32 2147483648, %v483_v0  ;;  %v493_v6 = vand.u32 2147483647, %v483_v0  ;;  %vm489_vm1 = vweird.f32 %v483_v0 }
 0x548   :  { %v496_v8 = vor.u32 1.1754944e-38, %v495_v4  ;;  %vm494_vm4 = vcmp.eq.f32.partialorder %v493_v6, 8.507059e+37 }
 0x54c   :  { %v1060_v1 = vpop.eup %1059 }
 0x54d   :  { %v485_v2 = vmul.f32 %v1060_v1, %v483_v0  ;;  %vm490_vm15 = vweird.f32 %v1060_v1 }
 0x54e   :  { %vm491_vm3 = vmor %vm489_vm1, %vm490_vm15 }
 0x54f   :  { %v486_v3 = vsub.f32 1.0, %v485_v2 }
 0x551   :  { %v487_v5 = vmul.f32 %v1060_v1, %v486_v3 }
 0x553   :  { %v488_v7 = vadd.f32 %v1060_v1, %v487_v5 }
 0x555   :  { %v492_v9 = vsel %vm491_vm3, %v1060_v1, %v488_v7 }
 0x556   :  { %v497_v10 = vsel %vm494_vm4, %v496_v8, %v492_v9 }
 0x557   :  { %v498_v11 = vmul.f32 %v1056_v57, %v497_v10 }
 0x559   :  { %v549_v12 = vadd.f32 %v498_v11, %v1281_v33  ;;  %v628_v33 = vpop.permute.xlu2 %627 }
 0x55b   :  { %v552_v13 = vmul.f32 0.25, %v549_v12 }
 0x55c   :  { %499 = vrot.lane.b32.xlu1 %v1242_v25, %s1105_s14  ;;  %v859_v25 = vpop.permute.xlu0 %858 }
 0x55d   :  { %968 = vst.msk [vmem:[#allocation2] sm:$0xff] %vm143_vm2, %v552_v13 }
 0x561   :  { %v754_v34 = vpop.permute.xlu2 %753 }
 0x564   :  { %856 = vrot.lane.b32.xlu1 %v84_v47, %s1105_s14  ;;  %v756_v32 = vpop.permute.xlu0 %755 }
 0x5b6   :  { %v587_v14 = vpop.xlane.xlu1 %586 }
 0x5b7   :  { %1061 = vrcp.f32 %v587_v14  ;;  %v599_v21 = vand.u32 2147483648, %v587_v14  ;;  %v597_v24 = vand.u32 2147483647, %v587_v14  ;;  %vm593_vm6 = vweird.f32 %v587_v14 }
 0x5b9   :  { %v600_v27 = vor.u32 1.1754944e-38, %v599_v21  ;;  %vm598_vm8 = vcmp.eq.f32.partialorder %v597_v24, 8.507059e+37 }
 0x5bd   :  { %v1062_v15 = vpop.eup %1061 }
 0x5be   :  { %v589_v19 = vmul.f32 %v1062_v15, %v587_v14  ;;  %vm594_vm5 = vweird.f32 %v1062_v15 }
 0x5bf   :  { %vm595_vm7 = vmor %vm593_vm6, %vm594_vm5 }
 0x5c0   :  { %v590_v20 = vsub.f32 1.0, %v589_v19 }
 0x5c2   :  { %v591_v22 = vmul.f32 %v1062_v15, %v590_v20 }
 0x5c4   :  { %v592_v26 = vadd.f32 %v1062_v15, %v591_v22 }
 0x5c6   :  { %v596_v28 = vsel %vm595_vm7, %v1062_v15, %v592_v26 }
 0x5c7   :  { %v601_v29 = vsel %vm598_vm8, %v600_v27, %v596_v28 }
 0x5c8   :  { %v1323_v30 = vmul.f32 %v1058_v62, %v601_v29 }
 0x5ca   :  { %1016 = vmatmul.msk.f32.vlgmr.msrb.gmra.mxu2 %vm143_vm2, %v1323_v30 }
 0x5cb   :  { %1026 = vmatpush.xpose.msk.msrb.mxu2 %vm143_vm2, %v859_v25 }
 0x5ce   :  { %v500_v31 = vpop.permute.xlu1 %499 }
 0x5cf   :  { %520 = vmatpush.msra.mxu3 %v500_v31 }
 0x5d0   :  { %1012 = vmatmul.msk.f32.vlgmr.msra.gmra.mxu3 %vm143_vm2, %v498_v11 }
 0x5d1   :  { %1017 = vmatpush.xpose.msk.msrb.mxu3 %vm143_vm2, %v630_v16 }
 0x5d5   :  { %1022 = vmatpush.xpose.msk.msra.mxu3 %vm143_vm2, %v756_v32 }
 0x5d6   :  { %v857_v38 = vpop.permute.xlu1 %856 }
 0x5d8   :  { %1018 = vmatmul.msk.f32.vlgmr.msrb.gmra.mxu3 %vm143_vm2, %v628_v33 }
 0x5e0   :  { %1023 = vmatmul.msk.f32.vlgmr.msra.gmra.mxu3 %vm143_vm2, %v754_v34 }
 0x64d   :  { %v623_v36 = vpop.f32.mrf.mxu2 }
 0x64e   :  { %1021 = vmatmul.msk.f32.vlgmr.msra.gmra.mxu2 %vm143_vm2, %v623_v36 }
 0x653   :  { %v522_v37 = vpop.f32.mrf.mxu3 }
 0x654   :  { %1013 = vmatmul.msk.f32.vlgmr.msrb.gmra.mxu0 %vm143_vm2, %v522_v37 }
 0x656   :  { %1027 = vmatmul.msk.f32.vlgmr.msrb.gmra.mxu2 %vm143_vm2, %v857_v38 }
 0x65b   :  { %v652_v39 = vpop.f32.mrf.mxu3 }
 0x65c   :  { %v655_v40 = vsel %vm143_vm2, %v652_v39, -inf }
 0x65d   :  { %656 = vmax.xlane.f32.xlu1 %v655_v40 }
 0x663   :  { %v778_v41 = vpop.f32.mrf.mxu3 }
 0x664   :  { %v781_v42 = vsel %vm143_vm2, %v778_v41, -inf }
 0x665   :  { %782 = vmax.xlane.f32.xlu2 %v781_v42 }
 0x6d0   :  { %v657_v43 = vpop.xlane.xlu1 %656 }
 0x6d1   :  { %v658_v44 = vsub.f32 %v652_v39, %v657_v43  ;;  %v1344_v45 = vpop.f32.mrf.mxu2  ;;  %v545_v38 = vpop.f32.mrf.mxu0 }
 0x6d3   :  { %v659_v47 = vmul.f32 1.442695, %v658_v44 }
 0x6d5   :  { %1063 = vpow2.f32 %v659_v47 }
 0x6d8   :  { %v783_v17 = vpop.xlane.xlu2 %782 }
 0x6d9   :  { %v784_v48 = vsub.f32 %v778_v41, %v783_v17  ;;  %v881_v49 = vpop.f32.mrf.mxu2 }
 0x6da   :  { %v884_v23 = vsel %vm143_vm2, %v881_v49, -inf }
 0x6db   :  { %v1064_v18 = vpop.eup %1063  ;;  %v785_v50 = vmul.f32 1.442695, %v784_v48  ;;  %885 = vmax.xlane.f32.xlu0 %v884_v23 }
 0x6dc   :  { %v661_v52 = vsel %vm143_vm2, %v1064_v18, 0.0 }
 0x6dd   :  { %1065 = vpow2.f32 %v785_v50  ;;  %662 = vadd.xlane.f32.xlu1 %v661_v52 }
 0x6e3   :  { %v1066_v53 = vpop.eup %1065 }
 0x6e4   :  { %v787_v54 = vsel %vm143_vm2, %v1066_v53, 0.0 }
 0x6e5   :  { %788 = vadd.xlane.f32.xlu0 %v787_v54 }
 0x6f6   :  { %680 = vrot.lane.b32.xlu1 %v1301_v46, %s1102_s9 }
 0x6f9   :  { %805 = vrot.lane.b32.xlu0 %v1301_v46, %s1101_s2 }
 0x74e   :  { %v886_v55 = vpop.xlane.xlu0 %885 }
 0x74f   :  { %v887_v56 = vsub.f32 %v881_v49, %v886_v55 }
 0x750   :  { %v663_v57 = vpop.xlane.xlu1 %662 }
 0x751   :  { %v888_v58 = vmul.f32 1.442695, %v887_v56  ;;  %1067 = vrcp.f32 %v663_v57  ;;  %v675_v2 = vand.u32 2147483648, %v663_v57  ;;  %vm669_vm10 = vweird.f32 %v663_v57 }
 0x752   :  { %v673_v4 = vand.u32 2147483647, %v663_v57 }
 0x753   :  { %1069 = vpow2.f32 %v888_v58  ;;  %v676_v8 = vor.u32 1.1754944e-38, %v675_v2 }
 0x754   :  { %vm674_vm12 = vcmp.eq.f32.partialorder %v673_v4, 8.507059e+37 }
 0x757   :  { %v1068_v59 = vpop.eup %1067 }
 0x758   :  { %v665_v60 = vmul.f32 %v1068_v59, %v663_v57  ;;  %v789_v61 = vpop.xlane.xlu0 %788  ;;  %vm670_vm9 = vweird.f32 %v1068_v59 }
 0x759   :  { %v1070_v62 = vpop.eup %1069  ;;  %1071 = vrcp.f32 %v789_v61  ;;  %vm671_vm11 = vmor %vm669_vm10, %vm670_vm9  ;;  %v801_v11 = vand.u32 2147483648, %v789_v61  ;;  %v799_v13 = vand.u32 2147483647, %v789_v61  ;;  %vm795_vm14 = vweird.f32 %v789_v61 }
 0x75a   :  { %v666_v63 = vsub.f32 1.0, %v665_v60  ;;  %v890_v0 = vsel %vm143_vm2, %v1070_v62, 0.0 }
 0x75b   :  { %891 = vadd.xlane.f32.xlu2 %v890_v0  ;;  %v802_v16 = vor.u32 1.1754944e-38, %v801_v11  ;;  %vm800_vm1 = vcmp.eq.f32.partialorder %v799_v13, 8.507059e+37 }
 0x75c   :  { %v667_v1 = vmul.f32 %v1068_v59, %v666_v63 }
 0x75e   :  { %v668_v3 = vadd.f32 %v1068_v59, %v667_v1 }
 0x75f   :  { %v1072_v5 = vpop.eup %1071 }
 0x760   :  { %v672_v6 = vsel %vm671_vm11, %v1068_v59, %v668_v3  ;;  %v791_v7 = vmul.f32 %v1072_v5, %v789_v61  ;;  %vm796_vm13 = vweird.f32 %v1072_v5 }
 0x761   :  { %v677_v10 = vsel %vm674_vm12, %v676_v8, %v672_v6  ;;  %vm797_vm15 = vmor %vm795_vm14, %vm796_vm13 }
 0x762   :  { %v792_v9 = vsub.f32 1.0, %v791_v7  ;;  %v678_v15 = vmul.f32 %v1064_v18, %v677_v10  ;;  %v1042_v18 = vld [vmem:[%s1381_s4 + $0x3] ss:$0 sm:$0xff] }
 0x764   :  { %v793_v12 = vmul.f32 %v1072_v5, %v792_v9  ;;  %v752_v22 = vadd.f32 %v678_v15, %v1323_v30 }
 0x766   :  { %v794_v14 = vadd.f32 %v1072_v5, %v793_v12 }
 0x768   :  { %v798_v19 = vsel %vm797_vm15, %v1072_v5, %v794_v14  ;;  %v681_v20 = vpop.permute.xlu1 %680 }
 0x769   :  { %v803_v21 = vsel %vm800_vm1, %v802_v16, %v798_v19  ;;  %701 = vmatpush.msra.mxu0 %v681_v20 }
 0x76a   :  { %1019 = vmatmul.msk.f32.vlgmr.msra.gmra.mxu0 %vm143_vm2, %v678_v15  ;;  %v804_v24 = vmul.f32 %v1066_v53, %v803_v21  ;;  %v548_v53 = vadd.f32 %v545_v38, %v1311_v51 }
 0x76b   :  { %v806_v26 = vpop.permute.xlu0 %805 }
 0x76c   :  { %826 = vmatpush.msrb.mxu0 %v806_v26  ;;  %v855_v27 = vadd.f32 %v804_v24, %v752_v22  ;;  %v551_v54 = vadd.f32 %v1042_v18, %v548_v53 }
 0x76e   :  { %952 = vmatpush.msra.mxu0 %v1336_v35 }
 0x772   :  { %1024 = vmatmul.msk.f32.vlgmr.msrb.gmra.mxu0 %vm143_vm2, %v804_v24 }
 0x773   :  { %908 = vrot.lane.b32.xlu2 %v1301_v46, %s1105_s14 }
 0x7ce   :  { %v892_v28 = vpop.xlane.xlu2 %891 }
 0x7cf   :  { %1073 = vrcp.f32 %v892_v28  ;;  %v904_v33 = vand.u32 2147483648, %v892_v28  ;;  %v902_v34 = vand.u32 2147483647, %v892_v28  ;;  %vm898_vm4 = vweird.f32 %v892_v28 }
 0x7d1   :  { %v905_v35 = vor.u32 1.1754944e-38, %v904_v33  ;;  %vm903_vm6 = vcmp.eq.f32.partialorder %v902_v34, 8.507059e+37 }
 0x7d5   :  { %v1074_v25 = vpop.eup %1073 }
 0x7d6   :  { %v894_v29 = vmul.f32 %v1074_v25, %v892_v28  ;;  %v909_v31 = vpop.permute.xlu2 %908  ;;  %vm899_vm3 = vweird.f32 %v1074_v25 }
 0x7d7   :  { %929 = vmatpush.msrb.mxu3 %v909_v31  ;;  %vm900_vm5 = vmor %vm898_vm4, %vm899_vm3 }
 0x7d8   :  { %v895_v32 = vsub.f32 1.0, %v894_v29 }
 0x7da   :  { %v896_v30 = vmul.f32 %v1074_v25, %v895_v32 }
 0x7dc   :  { %v897_v36 = vadd.f32 %v1074_v25, %v896_v30 }
 0x7de   :  { %v901_v37 = vsel %vm900_vm5, %v1074_v25, %v897_v36 }
 0x7df   :  { %v906_v39 = vsel %vm903_vm6, %v905_v35, %v901_v37 }
 0x7e0   :  { %v907_v46 = vmul.f32 %v1070_v62, %v906_v39 }
 0x7e2   :  { %1028 = vmatmul.msk.f32.vlgmr.msrb.gmra.mxu3 %vm143_vm2, %v907_v46  ;;  %v958_v40 = vadd.f32 %v907_v46, %v855_v27 }
 0x7e4   :  { %v960_v41 = vmul.f32 0.25, %v958_v40 }
 0x7e6   :  { %969 = vst.msk [vmem:[#allocation2 + $0x8] sm:$0xff] %vm143_vm2, %v960_v41 }
 0x7e7   :  { %v703_v42 = vpop.f32.mrf.mxu0  ;;  %984 = dma.vmem_to_hbm [thread:$0]  %s977_s1, 256, %s979_s24, [#allocation3], %s1107_s25, %s1107_s25, %s1108_s26  }
 0x7e8   :  { %1020 = vmatmul.msk.f32.vlgmr.msra.gmra.mxu1 %vm143_vm2, %v703_v42 }
 0x7ef   :  { %v828_v43 = vpop.f32.mrf.mxu0 }
 0x7f0   :  { %1025 = vmatmul.msk.f32.vlgmr.msrb.gmra.mxu1 %vm143_vm2, %v828_v43 }
 0x865   :  { %v931_v44 = vpop.f32.mrf.mxu3  ;;  %v726_v47 = vpop.f32.mrf.mxu1 }
 0x866   :  { %1029 = vmatmul.msk.f32.vlgmr.msra.gmra.mxu0 %vm143_vm2, %v931_v44  ;;  %v750_v48 = vadd.f32 %v1344_v45, %v726_v47  ;;  %vm966_vm2 = vcmask 523264  }
 0x86d   :  { %v851_v17 = vpop.f32.mrf.mxu1 }
 0x86e   :  { %v854_v49 = vadd.f32 %v851_v17, %v750_v48 }
 0x8e3   :  { %v954_v23 = vpop.f32.mrf.mxu0 }
 0x8e4   :  { %v957_v50 = vadd.f32 %v954_v23, %v854_v49 }
 0x8e6   :  { %v959_v52 = vadd.f32 %v1042_v18, %v957_v50 }
 0x8e8   :  { %962 = vrot.lane.b32.xlu0 %v959_v52, %s1109_s29 }
 0x95a   :  { %v963_v55 = vpop.permute.xlu0 %962 }
 0x95b   :  { %v965_v56 = vsel %vm58_vm0, %v551_v54, %v963_v55 }
 0x95c   :  { %967 = vst.msk [vmem:[%s1382_s5] sm:$0xff] %vm966_vm2, %v965_v56 }
 0x95d   :  { %1099 = dma.done.wait [#allocation3], 256  }
 0x95e   :  { %1100 = vsyncadd [#allocation3], 4294967040 }
 0x95f   :  { %991 = vsyncpa [#allocation3], 1 }

</bundles_post_ra>
